<compile_context>
chip_gen: v7x
topology: tpu7x:2x2x1
jax: 0.10.0
libtpu: 0.0.40
codegen_flags: <defaults>
</compile_context>

<pallas_src>
import jax
import jax.numpy as jnp
from jax import lax
from jax.experimental import pallas as pl
from jax.experimental.pallas import tpu as pltpu


# ---------------------------------------------------------------------------
# Tiling heuristics
# ---------------------------------------------------------------------------

def _pick_window_size(p2, topk, target=8):
    """Windows of `ti` query positions such that ti*topk is a multiple of 8."""
    ti = max(1, min(p2, target))
    while (ti * topk) % 8 != 0:
        ti += 1
    return ti


def _pick_d_tile(d, p2, itemsize, budget_bytes=4 << 20):
    """Lane-axis tile: multiple of 128 dividing d, kv slab p2*TD under budget."""
    if d % 128 != 0 or p2 * d * itemsize <= budget_bytes:
        return d
    td = max(128, (budget_bytes // (p2 * itemsize)) // 128 * 128)
    while td >= 128:
        if d % td == 0:
            return td
        td -= 128
    return d


# ---------------------------------------------------------------------------
# Kernels
# ---------------------------------------------------------------------------

def _make_mxu_gather_kernel(rows, p2, soft):
    """One-hot MXU gather (exact for bf16 kv: one-hot entries are 1.0/0.0)."""
    def kernel(*refs):
        if soft:
            idx_ref, w_ref, kv_ref, out_ref = refs
        else:
            idx_ref, kv_ref, out_ref = refs
        idx = idx_ref[...]                                         # (rows, 1) i32
        cols = lax.broadcasted_iota(jnp.int32, (rows, p2), 1)
        onehot = (cols == idx).astype(kv_ref.dtype)                # exact 1.0/0.0
        gathered = jnp.dot(onehot, kv_ref[...],
                           preferred_element_type=jnp.float32)     # (rows, td) f32
        if soft:
            gathered = gathered * w_ref[...].astype(jnp.float32)   # (rows, 1) bcast
        out_ref[...] = gathered.astype(out_ref.dtype)
    return kernel


def _make_copy_gather_kernel(rows, soft):
    """Exact dynamic-slice gather driven by SMEM-prefetched indices."""
    def kernel(*refs):
        if soft:
            idx_flat_ref, w_ref, kv_ref, out_ref = refs
        else:
            idx_flat_ref, kv_ref, out_ref = refs
        b = pl.program_id(0)
        w = pl.program_id(2)
        base = (b * pl.num_programs(2) + w) * rows
        # Static Python loop: static output-row offsets -> cheap vst addressing.
        for k in range(rows):
            row = idx_flat_ref[base + k]
            out_ref[pl.ds(k, 1), :] = kv_ref[pl.ds(row, 1), :].astype(out_ref.dtype)
        if soft:
            # One dense f32 multiply over the whole tile (weights never down-cast).
            out_ref[...] = (out_ref[...].astype(jnp.float32)
                            * w_ref[...].astype(jnp.float32)).astype(out_ref.dtype)
    return kernel


# ---------------------------------------------------------------------------
# Wrapper
# ---------------------------------------------------------------------------

def kv_gather(r_idx, r_weight, kv, mul_weight='none'):
    """Pallas equivalent of KVGather.forward.

    r_idx:    (n, p2, topk) int
    r_weight: (n, p2, topk) float
    kv:       (n, p2, w2, c_kv) float
    returns:  (n, p2, topk, w2, c_kv)
    """
    assert mul_weight in ('none', 'soft', 'hard')
    if mul_weight == 'hard':
        # TODO(synk): 'hard' routing is NotImplemented in the reference module too.
        raise NotImplementedError('differentiable hard routing TBA')

    n, p2, w2, c_kv = kv.shape
    topk = r_idx.shape[-1]
    d = w2 * c_kv
    soft = (mul_weight == 'soft')

    out_dtype = jnp.promote_types(kv.dtype, r_weight.dtype) if soft else kv.dtype

    # Window / tile selection.
    ti = _pick_window_size(p2, topk)
    num_win = pl.cdiv(p2, ti)
    p2_pad = num_win * ti
    rows = ti * topk                      # output rows per grid step (mult of 8)
    td = _pick_d_tile(d, p2, jnp.dtype(kv.dtype).itemsize)
    num_dt = d // td

    kv_flat = kv.reshape(n, p2, d)        # lane-dense: (w2, c_kv) folded into D

    # Clamp indices (OOB guard; torch.gather would raise) and pad p2 to windows.
    idx = jnp.clip(r_idx.astype(jnp.int32), 0, p2 - 1)
    pad = p2_pad - p2
    if pad:
        idx = jnp.pad(idx, ((0, 0), (0, pad), (0, 0)))

    use_mxu = (kv.dtype == jnp.bfloat16)

    grid = (n, num_dt, num_win)
    kv_spec = pl.BlockSpec((None, p2, td), lambda b, dt, w, *_: (b, 0, dt))
    out_spec = pl.BlockSpec((None, rows, td), lambda b, dt, w, *_: (b, w, dt))
    col_spec = pl.BlockSpec((None, rows, 1), lambda b, dt, w, *_: (b, w, 0))

    inputs, in_specs = [], []
    num_prefetch = 0
    if use_mxu:
        inputs.append(idx.reshape(n, p2_pad * topk, 1))      # VMEM index column
        in_specs.append(col_spec)
        kernel = _make_mxu_gather_kernel(rows, p2, soft)
    else:
        # Only r_idx goes to SMEM (needed for pl.ds addressing).
        inputs.append(idx.reshape(-1))
        num_prefetch = 1
        kernel = _make_copy_gather_kernel(rows, soft)

    if soft:
        wgt = r_weight.astype(jnp.float32)                    # full weight precision
        if pad:
            wgt = jnp.pad(wgt, ((0, 0), (0, pad), (0, 0)))
        inputs.append(wgt.reshape(n, p2_pad * topk, 1))
        in_specs.append(col_spec)

    inputs.append(kv_flat)
    in_specs.append(kv_spec)

    itemsize = jnp.dtype(kv.dtype).itemsize
    bytes_accessed = int(n * p2 * d * itemsize                       # kv, once
                         + n * p2_pad * topk * d * jnp.dtype(out_dtype).itemsize
                         + n * p2_pad * topk * (4 + (4 if soft else 0)))
    flops = int(2 * n * num_win * rows * p2 * d) if use_mxu else 0
    cost = pl.CostEstimate(flops=flops, transcendentals=0,
                           bytes_accessed=bytes_accessed)

    out_flat = pl.pallas_call(
        kernel,
        out_shape=jax.ShapeDtypeStruct((n, p2_pad * topk, d), out_dtype),
        grid_spec=pltpu.PrefetchScalarGridSpec(
            num_scalar_prefetch=num_prefetch,
            grid=grid,
            in_specs=in_specs,
            out_specs=out_spec),
        compiler_params=pltpu.CompilerParams(
            dimension_semantics=("parallel", "parallel", "arbitrary"),
            vmem_limit_bytes=32 * 1024 * 1024),
        cost_estimate=cost,
    )(*inputs)

    out = out_flat.reshape(n, p2_pad, topk, w2, c_kv)
    if pad:
        out = out[:, :p2]
    return out


# ---------------------------------------------------------------------------
# Pure-JAX reference (mirrors torch.gather semantics of the PyTorch module)
# ---------------------------------------------------------------------------

def _reference(r_idx, r_weight, kv, mul_weight):
    n, p2, w2, c_kv = kv.shape
    expanded = jnp.broadcast_to(kv[:, None], (n, p2, p2, w2, c_kv))
    idx = r_idx.astype(jnp.int32)[:, :, :, None, None]
    gathered = jnp.take_along_axis(expanded, idx, axis=2)
    if mul_weight == 'soft':
        gathered = r_weight[:, :, :, None, None] * gathered
    return gathered


if __name__ == "__main__":
    key = jax.random.PRNGKey(0)
    k1, k2, k3 = jax.random.split(key, 3)

    n, p2, w2, c_kv, topk = 2, 8, 16, 32, 3

    kv_f32 = jax.random.normal(k1, (n, p2, w2, c_kv), dtype=jnp.float32)
    r_idx = jax.random.randint(k2, (n, p2, topk), 0, p2, dtype=jnp.int32)
    r_weight = jax.nn.softmax(
        jax.random.normal(k3, (n, p2, topk), dtype=jnp.float32), axis=-1)

    # f32 kv exercises the exact copy path; bf16 kv exercises the MXU path.
    cases = [("f32", kv_f32), ("bf16", kv_f32.astype(jnp.bfloat16))]
    for name, kv in cases:
        for mode in ("none", "soft"):
            out = jax.block_until_ready(
                kv_gather(r_idx, r_weight, kv, mul_weight=mode))
            ref = _reference(r_idx, r_weight, kv, mode)
            assert out.shape == (n, p2, topk, w2, c_kv), (name, mode, out.shape)
            assert out.dtype == ref.dtype, (name, mode, out.dtype, ref.dtype)
            err = float(jnp.max(jnp.abs(out.astype(jnp.float32)
                                        - ref.astype(jnp.float32))))
            assert err <= 1e-5, (name, mode, err)

    print("KERNEL_OK")
</pallas_src>

<mosaic_0001>
module attributes {stable_mosaic.version = 11 : i64} {
  func.func @kernel(%arg0: i32, %arg1: i32, %arg2: i32, %arg3: memref<48xi32, #tpu.memory_space<smem>>, %arg4: memref<1x8x512xf32, #tpu.memory_space<vmem>>, %arg5: memref<1x24x512xf32, #tpu.memory_space<vmem>>) attributes {dimension_semantics = [#tpu.dimension_semantics<parallel>, #tpu.dimension_semantics<parallel>, #tpu.dimension_semantics<arbitrary>], iteration_bounds = array<i64: 2, 1, 1>, scalar_prefetch = 1 : i64, scratch_operands = 0 : i64, tpu.core_type = #tpu.core_type<tc>, window_params = [{transform_indices = @transform_0, window_bounds = array<i64: 1, 8, 512>}, {transform_indices = @transform_1, window_bounds = array<i64: 1, 24, 512>}]} {
    %c1_i32 = arith.constant 1 : i32
    %0 = arith.muli %arg0, %c1_i32 : i32
    %1 = arith.addi %0, %arg2 : i32
    %c24_i32 = arith.constant 24 : i32
    %2 = arith.muli %1, %c24_i32 : i32
    %c0_i32 = arith.constant 0 : i32
    %3 = arith.addi %2, %c0_i32 : i32
    %4 = arith.index_cast %3 : i32 to index
    %5 = memref.load %arg3[%4] : memref<48xi32, #tpu.memory_space<smem>>
    %c0 = arith.constant 0 : index
    %6 = arith.index_cast %5 : i32 to index
    %c0_0 = arith.constant 0 : index
    %7 = vector.load %arg4[%c0, %6, %c0_0] : memref<1x8x512xf32, #tpu.memory_space<vmem>>, vector<1x1x512xf32>
    %8 = vector.shape_cast %7 : vector<1x1x512xf32> to vector<1x512xf32>
    %c0_1 = arith.constant 0 : index
    %c0_2 = arith.constant 0 : index
    %c0_3 = arith.constant 0 : index
    %9 = vector.load %arg5[%c0_1, %c0_2, %c0_3] : memref<1x24x512xf32, #tpu.memory_space<vmem>>, vector<1x1x512xf32>
    %10 = vector.shape_cast %9 : vector<1x1x512xf32> to vector<1x512xf32>
    %11 = vector.shape_cast %8 : vector<1x512xf32> to vector<1x1x512xf32>
    tpu.vector_store %arg5[%c0_1, %c0_2, %c0_3], %11 {strides = array<i32>} : memref<1x24x512xf32, #tpu.memory_space<vmem>>, vector<1x1x512xf32>,
    %c1_i32_4 = arith.constant 1 : i32
    %12 = arith.addi %2, %c1_i32_4 : i32
    %13 = arith.index_cast %12 : i32 to index
    %14 = memref.load %arg3[%13] : memref<48xi32, #tpu.memory_space<smem>>
    %c0_5 = arith.constant 0 : index
    %15 = arith.index_cast %14 : i32 to index
    %c0_6 = arith.constant 0 : index
    %16 = vector.load %arg4[%c0_5, %15, %c0_6] : memref<1x8x512xf32, #tpu.memory_space<vmem>>, vector<1x1x512xf32>
    %17 = vector.shape_cast %16 : vector<1x1x512xf32> to vector<1x512xf32>
    %c0_7 = arith.constant 0 : index
    %c1 = arith.constant 1 : index
    %c0_8 = arith.constant 0 : index
    %18 = vector.load %arg5[%c0_7, %c1, %c0_8] : memref<1x24x512xf32, #tpu.memory_space<vmem>>, vector<1x1x512xf32>
    %19 = vector.shape_cast %18 : vector<1x1x512xf32> to vector<1x512xf32>
    %20 = vector.shape_cast %17 : vector<1x512xf32> to vector<1x1x512xf32>
    tpu.vector_store %arg5[%c0_7, %c1, %c0_8], %20 {strides = array<i32>} : memref<1x24x512xf32, #tpu.memory_space<vmem>>, vector<1x1x512xf32>,
    %c2_i32 = arith.constant 2 : i32
    %21 = arith.addi %2, %c2_i32 : i32
    %22 = arith.index_cast %21 : i32 to index
    %23 = memref.load %arg3[%22] : memref<48xi32, #tpu.memory_space<smem>>
    %c0_9 = arith.constant 0 : index
    %24 = arith.index_cast %23 : i32 to index
    %c0_10 = arith.constant 0 : index
    %25 = vector.load %arg4[%c0_9, %24, %c0_10] : memref<1x8x512xf32, #tpu.memory_space<vmem>>, vector<1x1x512xf32>
    %26 = vector.shape_cast %25 : vector<1x1x512xf32> to vector<1x512xf32>
    %c0_11 = arith.constant 0 : index
    %c2 = arith.constant 2 : index
    %c0_12 = arith.constant 0 : index
    %27 = vector.load %arg5[%c0_11, %c2, %c0_12] : memref<1x24x512xf32, #tpu.memory_space<vmem>>, vector<1x1x512xf32>
    %28 = vector.shape_cast %27 : vector<1x1x512xf32> to vector<1x512xf32>
    %29 = vector.shape_cast %26 : vector<1x512xf32> to vector<1x1x512xf32>
    tpu.vector_store %arg5[%c0_11, %c2, %c0_12], %29 {strides = array<i32>} : memref<1x24x512xf32, #tpu.memory_space<vmem>>, vector<1x1x512xf32>,
    %c3_i32 = arith.constant 3 : i32
    %30 = arith.addi %2, %c3_i32 : i32
    %31 = arith.index_cast %30 : i32 to index
    %32 = memref.load %arg3[%31] : memref<48xi32, #tpu.memory_space<smem>>
    %c0_13 = arith.constant 0 : index
    %33 = arith.index_cast %32 : i32 to index
    %c0_14 = arith.constant 0 : index
    %34 = vector.load %arg4[%c0_13, %33, %c0_14] : memref<1x8x512xf32, #tpu.memory_space<vmem>>, vector<1x1x512xf32>
    %35 = vector.shape_cast %34 : vector<1x1x512xf32> to vector<1x512xf32>
    %c0_15 = arith.constant 0 : index
    %c3 = arith.constant 3 : index
    %c0_16 = arith.constant 0 : index
    %36 = vector.load %arg5[%c0_15, %c3, %c0_16] : memref<1x24x512xf32, #tpu.memory_space<vmem>>, vector<1x1x512xf32>
    %37 = vector.shape_cast %36 : vector<1x1x512xf32> to vector<1x512xf32>
    %38 = vector.shape_cast %35 : vector<1x512xf32> to vector<1x1x512xf32>
    tpu.vector_store %arg5[%c0_15, %c3, %c0_16], %38 {strides = array<i32>} : memref<1x24x512xf32, #tpu.memory_space<vmem>>, vector<1x1x512xf32>,
    %c4_i32 = arith.constant 4 : i32
    %39 = arith.addi %2, %c4_i32 : i32
    %40 = arith.index_cast %39 : i32 to index
    %41 = memref.load %arg3[%40] : memref<48xi32, #tpu.memory_space<smem>>
    %c0_17 = arith.constant 0 : index
    %42 = arith.index_cast %41 : i32 to index
    %c0_18 = arith.constant 0 : index
    %43 = vector.load %arg4[%c0_17, %42, %c0_18] : memref<1x8x512xf32, #tpu.memory_space<vmem>>, vector<1x1x512xf32>
    %44 = vector.shape_cast %43 : vector<1x1x512xf32> to vector<1x512xf32>
    %c0_19 = arith.constant 0 : index
    %c4 = arith.constant 4 : index
    %c0_20 = arith.constant 0 : index
    %45 = vector.load %arg5[%c0_19, %c4, %c0_20] : memref<1x24x512xf32, #tpu.memory_space<vmem>>, vector<1x1x512xf32>
    %46 = vector.shape_cast %45 : vector<1x1x512xf32> to vector<1x512xf32>
    %47 = vector.shape_cast %44 : vector<1x512xf32> to vector<1x1x512xf32>
    tpu.vector_store %arg5[%c0_19, %c4, %c0_20], %47 {strides = array<i32>} : memref<1x24x512xf32, #tpu.memory_space<vmem>>, vector<1x1x512xf32>,
    %c5_i32 = arith.constant 5 : i32
    %48 = arith.addi %2, %c5_i32 : i32
    %49 = arith.index_cast %48 : i32 to index
    %50 = memref.load %arg3[%49] : memref<48xi32, #tpu.memory_space<smem>>
    %c0_21 = arith.constant 0 : index
    %51 = arith.index_cast %50 : i32 to index
    %c0_22 = arith.constant 0 : index
    %52 = vector.load %arg4[%c0_21, %51, %c0_22] : memref<1x8x512xf32, #tpu.memory_space<vmem>>, vector<1x1x512xf32>
    %53 = vector.shape_cast %52 : vector<1x1x512xf32> to vector<1x512xf32>
    %c0_23 = arith.constant 0 : index
    %c5 = arith.constant 5 : index
    %c0_24 = arith.constant 0 : index
    %54 = vector.load %arg5[%c0_23, %c5, %c0_24] : memref<1x24x512xf32, #tpu.memory_space<vmem>>, vector<1x1x512xf32>
    %55 = vector.shape_cast %54 : vector<1x1x512xf32> to vector<1x512xf32>
    %56 = vector.shape_cast %53 : vector<1x512xf32> to vector<1x1x512xf32>
    tpu.vector_store %arg5[%c0_23, %c5, %c0_24], %56 {strides = array<i32>} : memref<1x24x512xf32, #tpu.memory_space<vmem>>, vector<1x1x512xf32>,
    %c6_i32 = arith.constant 6 : i32
    %57 = arith.addi %2, %c6_i32 : i32
    %58 = arith.index_cast %57 : i32 to index
    %59 = memref.load %arg3[%58] : memref<48xi32, #tpu.memory_space<smem>>
    %c0_25 = arith.constant 0 : index
    %60 = arith.index_cast %59 : i32 to index
    %c0_26 = arith.constant 0 : index
    %61 = vector.load %arg4[%c0_25, %60, %c0_26] : memref<1x8x512xf32, #tpu.memory_space<vmem>>, vector<1x1x512xf32>
    %62 = vector.shape_cast %61 : vector<1x1x512xf32> to vector<1x512xf32>
    %c0_27 = arith.constant 0 : index
    %c6 = arith.constant 6 : index
    %c0_28 = arith.constant 0 : index
    %63 = vector.load %arg5[%c0_27, %c6, %c0_28] : memref<1x24x512xf32, #tpu.memory_space<vmem>>, vector<1x1x512xf32>
    %64 = vector.shape_cast %63 : vector<1x1x512xf32> to vector<1x512xf32>
    %65 = vector.shape_cast %62 : vector<1x512xf32> to vector<1x1x512xf32>
    tpu.vector_store %arg5[%c0_27, %c6, %c0_28], %65 {strides = array<i32>} : memref<1x24x512xf32, #tpu.memory_space<vmem>>, vector<1x1x512xf32>,
    %c7_i32 = arith.constant 7 : i32
    %66 = arith.addi %2, %c7_i32 : i32
    %67 = arith.index_cast %66 : i32 to index
    %68 = memref.load %arg3[%67] : memref<48xi32, #tpu.memory_space<smem>>
    %c0_29 = arith.constant 0 : index
    %69 = arith.index_cast %68 : i32 to index
    %c0_30 = arith.constant 0 : index
    %70 = vector.load %arg4[%c0_29, %69, %c0_30] : memref<1x8x512xf32, #tpu.memory_space<vmem>>, vector<1x1x512xf32>
    %71 = vector.shape_cast %70 : vector<1x1x512xf32> to vector<1x512xf32>
    %c0_31 = arith.constant 0 : index
    %c7 = arith.constant 7 : index
    %c0_32 = arith.constant 0 : index
    %72 = vector.load %arg5[%c0_31, %c7, %c0_32] : memref<1x24x512xf32, #tpu.memory_space<vmem>>, vector<1x1x512xf32>
    %73 = vector.shape_cast %72 : vector<1x1x512xf32> to vector<1x512xf32>
    %74 = vector.shape_cast %71 : vector<1x512xf32> to vector<1x1x512xf32>
    tpu.vector_store %arg5[%c0_31, %c7, %c0_32], %74 {strides = array<i32>} : memref<1x24x512xf32, #tpu.memory_space<vmem>>, vector<1x1x512xf32>,
    %c8_i32 = arith.constant 8 : i32
    %75 = arith.addi %2, %c8_i32 : i32
    %76 = arith.index_cast %75 : i32 to index
    %77 = memref.load %arg3[%76] : memref<48xi32, #tpu.memory_space<smem>>
    %c0_33 = arith.constant 0 : index
    %78 = arith.index_cast %77 : i32 to index
    %c0_34 = arith.constant 0 : index
    %79 = vector.load %arg4[%c0_33, %78, %c0_34] : memref<1x8x512xf32, #tpu.memory_space<vmem>>, vector<1x1x512xf32>
    %80 = vector.shape_cast %79 : vector<1x1x512xf32> to vector<1x512xf32>
    %c0_35 = arith.constant 0 : index
    %c8 = arith.constant 8 : index
    %c0_36 = arith.constant 0 : index
    %81 = vector.load %arg5[%c0_35, %c8, %c0_36] : memref<1x24x512xf32, #tpu.memory_space<vmem>>, vector<1x1x512xf32>
    %82 = vector.shape_cast %81 : vector<1x1x512xf32> to vector<1x512xf32>
    %83 = vector.shape_cast %80 : vector<1x512xf32> to vector<1x1x512xf32>
    tpu.vector_store %arg5[%c0_35, %c8, %c0_36], %83 {strides = array<i32>} : memref<1x24x512xf32, #tpu.memory_space<vmem>>, vector<1x1x512xf32>,
    %c9_i32 = arith.constant 9 : i32
    %84 = arith.addi %2, %c9_i32 : i32
    %85 = arith.index_cast %84 : i32 to index
    %86 = memref.load %arg3[%85] : memref<48xi32, #tpu.memory_space<smem>>
    %c0_37 = arith.constant 0 : index
    %87 = arith.index_cast %86 : i32 to index
    %c0_38 = arith.constant 0 : index
    %88 = vector.load %arg4[%c0_37, %87, %c0_38] : memref<1x8x512xf32, #tpu.memory_space<vmem>>, vector<1x1x512xf32>
    %89 = vector.shape_cast %88 : vector<1x1x512xf32> to vector<1x512xf32>
    %c0_39 = arith.constant 0 : index
    %c9 = arith.constant 9 : index
    %c0_40 = arith.constant 0 : index
    %90 = vector.load %arg5[%c0_39, %c9, %c0_40] : memref<1x24x512xf32, #tpu.memory_space<vmem>>, vector<1x1x512xf32>
    %91 = vector.shape_cast %90 : vector<1x1x512xf32> to vector<1x512xf32>
    %92 = vector.shape_cast %89 : vector<1x512xf32> to vector<1x1x512xf32>
    tpu.vector_store %arg5[%c0_39, %c9, %c0_40], %92 {strides = array<i32>} : memref<1x24x512xf32, #tpu.memory_space<vmem>>, vector<1x1x512xf32>,
    %c10_i32 = arith.constant 10 : i32
    %93 = arith.addi %2, %c10_i32 : i32
    %94 = arith.index_cast %93 : i32 to index
    %95 = memref.load %arg3[%94] : memref<48xi32, #tpu.memory_space<smem>>
    %c0_41 = arith.constant 0 : index
    %96 = arith.index_cast %95 : i32 to index
    %c0_42 = arith.constant 0 : index
    %97 = vector.load %arg4[%c0_41, %96, %c0_42] : memref<1x8x512xf32, #tpu.memory_space<vmem>>, vector<1x1x512xf32>
    %98 = vector.shape_cast %97 : vector<1x1x512xf32> to vector<1x512xf32>
    %c0_43 = arith.constant 0 : index
    %c10 = arith.constant 10 : index
    %c0_44 = arith.constant 0 : index
    %99 = vector.load %arg5[%c0_43, %c10, %c0_44] : memref<1x24x512xf32, #tpu.memory_space<vmem>>, vector<1x1x512xf32>
    %100 = vector.shape_cast %99 : vector<1x1x512xf32> to vector<1x512xf32>
    %101 = vector.shape_cast %98 : vector<1x512xf32> to vector<1x1x512xf32>
    tpu.vector_store %arg5[%c0_43, %c10, %c0_44], %101 {strides = array<i32>} : memref<1x24x512xf32, #tpu.memory_space<vmem>>, vector<1x1x512xf32>,
    %c11_i32 = arith.constant 11 : i32
    %102 = arith.addi %2, %c11_i32 : i32
    %103 = arith.index_cast %102 : i32 to index
    %104 = memref.load %arg3[%103] : memref<48xi32, #tpu.memory_space<smem>>
    %c0_45 = arith.constant 0 : index
    %105 = arith.index_cast %104 : i32 to index
    %c0_46 = arith.constant 0 : index
    %106 = vector.load %arg4[%c0_45, %105, %c0_46] : memref<1x8x512xf32, #tpu.memory_space<vmem>>, vector<1x1x512xf32>
    %107 = vector.shape_cast %106 : vector<1x1x512xf32> to vector<1x512xf32>
    %c0_47 = arith.constant 0 : index
    %c11 = arith.constant 11 : index
    %c0_48 = arith.constant 0 : index
    %108 = vector.load %arg5[%c0_47, %c11, %c0_48] : memref<1x24x512xf32, #tpu.memory_space<vmem>>, vector<1x1x512xf32>
    %109 = vector.shape_cast %108 : vector<1x1x512xf32> to vector<1x512xf32>
    %110 = vector.shape_cast %107 : vector<1x512xf32> to vector<1x1x512xf32>
    tpu.vector_store %arg5[%c0_47, %c11, %c0_48], %110 {strides = array<i32>} : memref<1x24x512xf32, #tpu.memory_space<vmem>>, vector<1x1x512xf32>,
    %c12_i32 = arith.constant 12 : i32
    %111 = arith.addi %2, %c12_i32 : i32
    %112 = arith.index_cast %111 : i32 to index
    %113 = memref.load %arg3[%112] : memref<48xi32, #tpu.memory_space<smem>>
    %c0_49 = arith.constant 0 : index
    %114 = arith.index_cast %113 : i32 to index
    %c0_50 = arith.constant 0 : index
    %115 = vector.load %arg4[%c0_49, %114, %c0_50] : memref<1x8x512xf32, #tpu.memory_space<vmem>>, vector<1x1x512xf32>
    %116 = vector.shape_cast %115 : vector<1x1x512xf32> to vector<1x512xf32>
    %c0_51 = arith.constant 0 : index
    %c12 = arith.constant 12 : index
    %c0_52 = arith.constant 0 : index
    %117 = vector.load %arg5[%c0_51, %c12, %c0_52] : memref<1x24x512xf32, #tpu.memory_space<vmem>>, vector<1x1x512xf32>
    %118 = vector.shape_cast %117 : vector<1x1x512xf32> to vector<1x512xf32>
    %119 = vector.shape_cast %116 : vector<1x512xf32> to vector<1x1x512xf32>
    tpu.vector_store %arg5[%c0_51, %c12, %c0_52], %119 {strides = array<i32>} : memref<1x24x512xf32, #tpu.memory_space<vmem>>, vector<1x1x512xf32>,
    %c13_i32 = arith.constant 13 : i32
    %120 = arith.addi %2, %c13_i32 : i32
    %121 = arith.index_cast %120 : i32 to index
    %122 = memref.load %arg3[%121] : memref<48xi32, #tpu.memory_space<smem>>
    %c0_53 = arith.constant 0 : index
    %123 = arith.index_cast %122 : i32 to index
    %c0_54 = arith.constant 0 : index
    %124 = vector.load %arg4[%c0_53, %123, %c0_54] : memref<1x8x512xf32, #tpu.memory_space<vmem>>, vector<1x1x512xf32>
    %125 = vector.shape_cast %124 : vector<1x1x512xf32> to vector<1x512xf32>
    %c0_55 = arith.constant 0 : index
    %c13 = arith.constant 13 : index
    %c0_56 = arith.constant 0 : index
    %126 = vector.load %arg5[%c0_55, %c13, %c0_56] : memref<1x24x512xf32, #tpu.memory_space<vmem>>, vector<1x1x512xf32>
    %127 = vector.shape_cast %126 : vector<1x1x512xf32> to vector<1x512xf32>
    %128 = vector.shape_cast %125 : vector<1x512xf32> to vector<1x1x512xf32>
    tpu.vector_store %arg5[%c0_55, %c13, %c0_56], %128 {strides = array<i32>} : memref<1x24x512xf32, #tpu.memory_space<vmem>>, vector<1x1x512xf32>,
    %c14_i32 = arith.constant 14 : i32
    %129 = arith.addi %2, %c14_i32 : i32
    %130 = arith.index_cast %129 : i32 to index
    %131 = memref.load %arg3[%130] : memref<48xi32, #tpu.memory_space<smem>>
    %c0_57 = arith.constant 0 : index
    %132 = arith.index_cast %131 : i32 to index
    %c0_58 = arith.constant 0 : index
    %133 = vector.load %arg4[%c0_57, %132, %c0_58] : memref<1x8x512xf32, #tpu.memory_space<vmem>>, vector<1x1x512xf32>
    %134 = vector.shape_cast %133 : vector<1x1x512xf32> to vector<1x512xf32>
    %c0_59 = arith.constant 0 : index
    %c14 = arith.constant 14 : index
    %c0_60 = arith.constant 0 : index
    %135 = vector.load %arg5[%c0_59, %c14, %c0_60] : memref<1x24x512xf32, #tpu.memory_space<vmem>>, vector<1x1x512xf32>
    %136 = vector.shape_cast %135 : vector<1x1x512xf32> to vector<1x512xf32>
    %137 = vector.shape_cast %134 : vector<1x512xf32> to vector<1x1x512xf32>
    tpu.vector_store %arg5[%c0_59, %c14, %c0_60], %137 {strides = array<i32>} : memref<1x24x512xf32, #tpu.memory_space<vmem>>, vector<1x1x512xf32>,
    %c15_i32 = arith.constant 15 : i32
    %138 = arith.addi %2, %c15_i32 : i32
    %139 = arith.index_cast %138 : i32 to index
    %140 = memref.load %arg3[%139] : memref<48xi32, #tpu.memory_space<smem>>
    %c0_61 = arith.constant 0 : index
    %141 = arith.index_cast %140 : i32 to index
    %c0_62 = arith.constant 0 : index
    %142 = vector.load %arg4[%c0_61, %141, %c0_62] : memref<1x8x512xf32, #tpu.memory_space<vmem>>, vector<1x1x512xf32>
    %143 = vector.shape_cast %142 : vector<1x1x512xf32> to vector<1x512xf32>
    %c0_63 = arith.constant 0 : index
    %c15 = arith.constant 15 : index
    %c0_64 = arith.constant 0 : index
    %144 = vector.load %arg5[%c0_63, %c15, %c0_64] : memref<1x24x512xf32, #tpu.memory_space<vmem>>, vector<1x1x512xf32>
    %145 = vector.shape_cast %144 : vector<1x1x512xf32> to vector<1x512xf32>
    %146 = vector.shape_cast %143 : vector<1x512xf32> to vector<1x1x512xf32>
    tpu.vector_store %arg5[%c0_63, %c15, %c0_64], %146 {strides = array<i32>} : memref<1x24x512xf32, #tpu.memory_space<vmem>>, vector<1x1x512xf32>,
    %c16_i32 = arith.constant 16 : i32
    %147 = arith.addi %2, %c16_i32 : i32
    %148 = arith.index_cast %147 : i32 to index
    %149 = memref.load %arg3[%148] : memref<48xi32, #tpu.memory_space<smem>>
    %c0_65 = arith.constant 0 : index
    %150 = arith.index_cast %149 : i32 to index
    %c0_66 = arith.constant 0 : index
    %151 = vector.load %arg4[%c0_65, %150, %c0_66] : memref<1x8x512xf32, #tpu.memory_space<vmem>>, vector<1x1x512xf32>
    %152 = vector.shape_cast %151 : vector<1x1x512xf32> to vector<1x512xf32>
    %c0_67 = arith.constant 0 : index
    %c16 = arith.constant 16 : index
    %c0_68 = arith.constant 0 : index
    %153 = vector.load %arg5[%c0_67, %c16, %c0_68] : memref<1x24x512xf32, #tpu.memory_space<vmem>>, vector<1x1x512xf32>
    %154 = vector.shape_cast %153 : vector<1x1x512xf32> to vector<1x512xf32>
    %155 = vector.shape_cast %152 : vector<1x512xf32> to vector<1x1x512xf32>
    tpu.vector_store %arg5[%c0_67, %c16, %c0_68], %155 {strides = array<i32>} : memref<1x24x512xf32, #tpu.memory_space<vmem>>, vector<1x1x512xf32>,
    %c17_i32 = arith.constant 17 : i32
    %156 = arith.addi %2, %c17_i32 : i32
    %157 = arith.index_cast %156 : i32 to index
    %158 = memref.load %arg3[%157] : memref<48xi32, #tpu.memory_space<smem>>
    %c0_69 = arith.constant 0 : index
    %159 = arith.index_cast %158 : i32 to index
    %c0_70 = arith.constant 0 : index
    %160 = vector.load %arg4[%c0_69, %159, %c0_70] : memref<1x8x512xf32, #tpu.memory_space<vmem>>, vector<1x1x512xf32>
    %161 = vector.shape_cast %160 : vector<1x1x512xf32> to vector<1x512xf32>
    %c0_71 = arith.constant 0 : index
    %c17 = arith.constant 17 : index
    %c0_72 = arith.constant 0 : index
    %162 = vector.load %arg5[%c0_71, %c17, %c0_72] : memref<1x24x512xf32, #tpu.memory_space<vmem>>, vector<1x1x512xf32>
    %163 = vector.shape_cast %162 : vector<1x1x512xf32> to vector<1x512xf32>
    %164 = vector.shape_cast %161 : vector<1x512xf32> to vector<1x1x512xf32>
    tpu.vector_store %arg5[%c0_71, %c17, %c0_72], %164 {strides = array<i32>} : memref<1x24x512xf32, #tpu.memory_space<vmem>>, vector<1x1x512xf32>,
    %c18_i32 = arith.constant 18 : i32
    %165 = arith.addi %2, %c18_i32 : i32
    %166 = arith.index_cast %165 : i32 to index
    %167 = memref.load %arg3[%166] : memref<48xi32, #tpu.memory_space<smem>>
    %c0_73 = arith.constant 0 : index
    %168 = arith.index_cast %167 : i32 to index
    %c0_74 = arith.constant 0 : index
    %169 = vector.load %arg4[%c0_73, %168, %c0_74] : memref<1x8x512xf32, #tpu.memory_space<vmem>>, vector<1x1x512xf32>
    %170 = vector.shape_cast %169 : vector<1x1x512xf32> to vector<1x512xf32>
    %c0_75 = arith.constant 0 : index
    %c18 = arith.constant 18 : index
    %c0_76 = arith.constant 0 : index
    %171 = vector.load %arg5[%c0_75, %c18, %c0_76] : memref<1x24x512xf32, #tpu.memory_space<vmem>>, vector<1x1x512xf32>
    %172 = vector.shape_cast %171 : vector<1x1x512xf32> to vector<1x512xf32>
    %173 = vector.shape_cast %170 : vector<1x512xf32> to vector<1x1x512xf32>
    tpu.vector_store %arg5[%c0_75, %c18, %c0_76], %173 {strides = array<i32>} : memref<1x24x512xf32, #tpu.memory_space<vmem>>, vector<1x1x512xf32>,
    %c19_i32 = arith.constant 19 : i32
    %174 = arith.addi %2, %c19_i32 : i32
    %175 = arith.index_cast %174 : i32 to index
    %176 = memref.load %arg3[%175] : memref<48xi32, #tpu.memory_space<smem>>
    %c0_77 = arith.constant 0 : index
    %177 = arith.index_cast %176 : i32 to index
    %c0_78 = arith.constant 0 : index
    %178 = vector.load %arg4[%c0_77, %177, %c0_78] : memref<1x8x512xf32, #tpu.memory_space<vmem>>, vector<1x1x512xf32>
    %179 = vector.shape_cast %178 : vector<1x1x512xf32> to vector<1x512xf32>
    %c0_79 = arith.constant 0 : index
    %c19 = arith.constant 19 : index
    %c0_80 = arith.constant 0 : index
    %180 = vector.load %arg5[%c0_79, %c19, %c0_80] : memref<1x24x512xf32, #tpu.memory_space<vmem>>, vector<1x1x512xf32>
    %181 = vector.shape_cast %180 : vector<1x1x512xf32> to vector<1x512xf32>
    %182 = vector.shape_cast %179 : vector<1x512xf32> to vector<1x1x512xf32>
    tpu.vector_store %arg5[%c0_79, %c19, %c0_80], %182 {strides = array<i32>} : memref<1x24x512xf32, #tpu.memory_space<vmem>>, vector<1x1x512xf32>,
    %c20_i32 = arith.constant 20 : i32
    %183 = arith.addi %2, %c20_i32 : i32
    %184 = arith.index_cast %183 : i32 to index
    %185 = memref.load %arg3[%184] : memref<48xi32, #tpu.memory_space<smem>>
    %c0_81 = arith.constant 0 : index
    %186 = arith.index_cast %185 : i32 to index
    %c0_82 = arith.constant 0 : index
    %187 = vector.load %arg4[%c0_81, %186, %c0_82] : memref<1x8x512xf32, #tpu.memory_space<vmem>>, vector<1x1x512xf32>
    %188 = vector.shape_cast %187 : vector<1x1x512xf32> to vector<1x512xf32>
    %c0_83 = arith.constant 0 : index
    %c20 = arith.constant 20 : index
    %c0_84 = arith.constant 0 : index
    %189 = vector.load %arg5[%c0_83, %c20, %c0_84] : memref<1x24x512xf32, #tpu.memory_space<vmem>>, vector<1x1x512xf32>
    %190 = vector.shape_cast %189 : vector<1x1x512xf32> to vector<1x512xf32>
    %191 = vector.shape_cast %188 : vector<1x512xf32> to vector<1x1x512xf32>
    tpu.vector_store %arg5[%c0_83, %c20, %c0_84], %191 {strides = array<i32>} : memref<1x24x512xf32, #tpu.memory_space<vmem>>, vector<1x1x512xf32>,
    %c21_i32 = arith.constant 21 : i32
    %192 = arith.addi %2, %c21_i32 : i32
    %193 = arith.index_cast %192 : i32 to index
    %194 = memref.load %arg3[%193] : memref<48xi32, #tpu.memory_space<smem>>
    %c0_85 = arith.constant 0 : index
    %195 = arith.index_cast %194 : i32 to index
    %c0_86 = arith.constant 0 : index
    %196 = vector.load %arg4[%c0_85, %195, %c0_86] : memref<1x8x512xf32, #tpu.memory_space<vmem>>, vector<1x1x512xf32>
    %197 = vector.shape_cast %196 : vector<1x1x512xf32> to vector<1x512xf32>
    %c0_87 = arith.constant 0 : index
    %c21 = arith.constant 21 : index
    %c0_88 = arith.constant 0 : index
    %198 = vector.load %arg5[%c0_87, %c21, %c0_88] : memref<1x24x512xf32, #tpu.memory_space<vmem>>, vector<1x1x512xf32>
    %199 = vector.shape_cast %198 : vector<1x1x512xf32> to vector<1x512xf32>
    %200 = vector.shape_cast %197 : vector<1x512xf32> to vector<1x1x512xf32>
    tpu.vector_store %arg5[%c0_87, %c21, %c0_88], %200 {strides = array<i32>} : memref<1x24x512xf32, #tpu.memory_space<vmem>>, vector<1x1x512xf32>,
    %c22_i32 = arith.constant 22 : i32
    %201 = arith.addi %2, %c22_i32 : i32
    %202 = arith.index_cast %201 : i32 to index
    %203 = memref.load %arg3[%202] : memref<48xi32, #tpu.memory_space<smem>>
    %c0_89 = arith.constant 0 : index
    %204 = arith.index_cast %203 : i32 to index
    %c0_90 = arith.constant 0 : index
    %205 = vector.load %arg4[%c0_89, %204, %c0_90] : memref<1x8x512xf32, #tpu.memory_space<vmem>>, vector<1x1x512xf32>
    %206 = vector.shape_cast %205 : vector<1x1x512xf32> to vector<1x512xf32>
    %c0_91 = arith.constant 0 : index
    %c22 = arith.constant 22 : index
    %c0_92 = arith.constant 0 : index
    %207 = vector.load %arg5[%c0_91, %c22, %c0_92] : memref<1x24x512xf32, #tpu.memory_space<vmem>>, vector<1x1x512xf32>
    %208 = vector.shape_cast %207 : vector<1x1x512xf32> to vector<1x512xf32>
    %209 = vector.shape_cast %206 : vector<1x512xf32> to vector<1x1x512xf32>
    tpu.vector_store %arg5[%c0_91, %c22, %c0_92], %209 {strides = array<i32>} : memref<1x24x512xf32, #tpu.memory_space<vmem>>, vector<1x1x512xf32>,
    %c23_i32 = arith.constant 23 : i32
    %210 = arith.addi %2, %c23_i32 : i32
    %211 = arith.index_cast %210 : i32 to index
    %212 = memref.load %arg3[%211] : memref<48xi32, #tpu.memory_space<smem>>
    %c0_93 = arith.constant 0 : index
    %213 = arith.index_cast %212 : i32 to index
    %c0_94 = arith.constant 0 : index
    %214 = vector.load %arg4[%c0_93, %213, %c0_94] : memref<1x8x512xf32, #tpu.memory_space<vmem>>, vector<1x1x512xf32>
    %215 = vector.shape_cast %214 : vector<1x1x512xf32> to vector<1x512xf32>
    %c0_95 = arith.constant 0 : index
    %c23 = arith.constant 23 : index
    %c0_96 = arith.constant 0 : index
    %216 = vector.load %arg5[%c0_95, %c23, %c0_96] : memref<1x24x512xf32, #tpu.memory_space<vmem>>, vector<1x1x512xf32>
    %217 = vector.shape_cast %216 : vector<1x1x512xf32> to vector<1x512xf32>
    %218 = vector.shape_cast %215 : vector<1x512xf32> to vector<1x1x512xf32>
    tpu.vector_store %arg5[%c0_95, %c23, %c0_96], %218 {strides = array<i32>} : memref<1x24x512xf32, #tpu.memory_space<vmem>>, vector<1x1x512xf32>,
    return
  }
  func.func @transform_0(%arg0: i32, %arg1: i32, %arg2: i32, %arg3: memref<48xi32, #tpu.memory_space<smem>>) -> (i32, i32, i32) {
    %c0_i32 = arith.constant 0 : i32
    %c0_i32_0 = arith.constant 0 : i32
    return %arg0, %c0_i32, %arg1 : i32, i32, i32
  }
  func.func @transform_1(%arg0: i32, %arg1: i32, %arg2: i32, %arg3: memref<48xi32, #tpu.memory_space<smem>>) -> (i32, i32, i32) {
    %c0_i32 = arith.constant 0 : i32
    return %arg0, %arg2, %arg1 : i32, i32, i32
  }
}

</mosaic_0001>

<bundles_post_ra>
// kernel: tpu_custom_call.1
= control target key start
LH: loop header
LB: loop body
LE: loop exit
PB: predicated region body
PF: predicated region fallthrough
CT: control target
= control target key end

     0   :  { %s1387_s0 = inlined_call_operand.hbm [shape: s32[48], index: 0, kind: input, shape index: {}]   ;;  %s1388_s1 = inlined_call_operand.hbm [shape: f32[2,8,512], index: 1, kind: input, shape index: {}]   ;;  %s1389_s2 = inlined_call_operand.hbm [shape: f32[2,24,512], index: 2, kind: output, shape index: {}]  }
   0x1   :  { %1392 = sst [smem:[#allocation12_spill]] %s1388_s1  ;;  %s866_s11 = scalar_lea.hbm %s1387_s0, 16 }
   0x2   :  { %p867_p0 = scmp.ne.s32.totalorder %s1387_s0, %s866_s11  ;;  %p870_p1 = scmp.lt.u32.totalorder %s866_s11, %s1387_s0 }
   0x4   :  { %p872_p2 = pnand %p870_p1, %p867_p0 }
   0x6   :  { %875 = shalt.err (!%p872_p2)  }
   0x7   :  { %s992_s16 = smov [#allocation3]  }
   0x8   :  { %8 = dma.hbm_to_smem %s1387_s0, 16, %s992_s16, [#allocation2] }
   0x9   :  { %958 = dma.done.wait [#allocation2], 16 }
   0xa   :  { %959 = vsyncadd [#allocation2], 4294967280 }
   0xb   :  { %10 = sfence }
   0xc   :  { %11 = vsyncpa [#allocation5], 0 }
   0xd   :  { %13 = vsyncpa [#allocation5 + $0x1], 0 }
   0xe   :  { %14 = vsyncpa [#allocation6], 0 }
   0xf   :  { %16 = vsyncpa [#allocation6 + $0x1], 0  ;;  %s1024_s19 = smov 0   ;;  %s1026_s20 = smov 0  }
  0x10   :  { %s1028_s21 = smov 0   ;;  %s1030_s22 = smov 0  }
  0x11   :  { %s1032_s23 = smov 0   ;;  %s1034_s24 = smov 0  }
  0x12 LB: > { %s691_s0 = sadd.s32 4294967295, %s990_s24   ;;  %s692_s25 = sadd.s32 4294967294, %s990_s24   ;;  %s990_s24 = sphi %s1034_s24, %s22_s24   ;;  %s986_s23 = sphi %s1032_s23, %s1414_s23   ;;  %s982_s22 = sphi %s1030_s22, %s1413_s22   ;;  %s978_s21 = sphi %s1028_s21, %s1412_s21   ;;  %s974_s20 = sphi %s1026_s20, %s1411_s20   ;;  %s970_s19 = sphi %s1024_s19, %s1410_s19  }
  0x13   : > { %s41_s26 = sadd.s32 1, %s986_s23  ;;  %s50_s27 = sadd.s32 1, %s978_s21 }
  0x14   : > { %p43_p3 = scmp.ge.s32.totalorder %s41_s26, 2  ;;  %p57_p4 = scmp.ne.s32.totalorder %s978_s21, %s974_s20 }
  0x15   : > { %p58_p5 = scmp.eq.s32.totalorder %s990_s24, 0  ;;  %p63_p6 = scmp.ne.s32.totalorder %s974_s20, %s970_s19 }
  0x16   : > { %s1416_s26 = smov (%p43_p3, %s41_s26), 0  ;;  %p64_p8 = scmp.eq.s32.totalorder %s691_s0, 0 }
  0x17   : > { %1393 = sst [smem:[#allocation11_spill]] %s1416_s26  ;;  %p1065_p7 = por %p58_p5, %p57_p4 }
  0x18   : > { %s45_s29 = ssub.s32 %s986_s23, %s1416_s26  ;;  %p91_p9 = scmp.eq.s32.totalorder %s691_s0, 1 }
  0x19   : > { %p48_p10 = scmp.eq.s32.totalorder %s45_s29, 0  ;;  %p1071_p11 = por %p64_p8, %p63_p6 }
  0x1a   : > { %p1075_p12 = por %p91_p9, %p57_p4  ;;  %p97_p13 = scmp.eq.s32.totalorder %s692_s25, 1 }
  0x1b   : > { %s1080_s4 = scalar_select %p48_p10, %s978_s21, %s50_s27  }
  0x1c   : > { %s1396_s3 = scalar_select %p1075_p12, 1, 0 }
  0x1d   : > { %p1082_p0 = por %p97_p13, %p63_p6  ;;  %p813_p2 = scmp.lt.s32.totalorder %s990_s24, 2 }
  0x1e   : > { %s117_s6 = sand.u32 1, %s978_s21   ;;  %s774_s8 = sshll.u32 %s986_s23, 9 }
  0x1f   : > { %s1397_s5 = scalar_select %p1082_p0, 1, 0 }
  0x20   : > { %s695_s7 = sshll.u32 %s117_s6, 5  ;;  %s1398_s1 = sld [smem:[#allocation12_spill]] }
  0x21   : > { %s121_s12 = scalar_lea.vmem [#allocation4], %s695_s7  ;;  %p1099_p3 = pnand %p813_p2, %p1065_p7 }
  0x22   : > { %s131_s13 = sshll.u32 %s121_s12, 4  ;;  %s118_s15 = scalar_lea.sflag [#allocation5], %s117_s6  ;;  %s1095_s13 = int_to_ptr.vmem [resolvable:$true] %s131_s13 }
  0x23   : > { %p878_p8 = pneg %p1099_p3 }
  0x26   : > { %s1093_s11 = scalar_lea.hbm %s1398_s1, %s774_s8  ;;  %s881_s0 = scalar_lea.hbm %s1398_s1, 1024 }
  0x27   : > { %s876_s16 = scalar_lea.hbm %s1093_s11, 512  ;;  %p882_p7 = scmp.lt.u32.totalorder %s1093_s11, %s1398_s1 }
  0x28   : > { %p877_p6 = scmp.ne.s32.totalorder %s1093_s11, %s876_s16  ;;  %p883_p13 = scmp.lt.u32.totalorder %s881_s0, %s876_s16 }
  0x29   : > { %p885_p1 = scmp.lt.u32.totalorder %s876_s16, %s1093_s11 }
  0x2a   : > { %p879_p9 = pnand %p878_p8, %p877_p6  ;;  %p884_p2 = por %p883_p13, %p882_p7 }
  0x2c   : > { %p880_p10 = pneg %p879_p9  ;;  %p886_p4 = por %p885_p1, %p884_p2 }
  0x2e   : > { %p887_p5 = pnand %p886_p4, %p880_p10 }
  0x30   : > { %890 = shalt.err (!%p887_p5)
}
  0x31   : > { %s891_s28 = scalar_lea.vmem %s1095_s13, 512  ;;  %s993_s29 = smov [#allocation4]  }
  0x32   : > { %p892_p6 = scmp.ne.s32.totalorder %s1095_s13, %s891_s28  ;;  %s896_s6 = sshll.u32 %s993_s29, 4  ;;  %s897_s6 = int_to_ptr.vmem [resolvable:$false] %s896_s6 }
  0x33   : > { %s898_s7 = scalar_lea.vmem %s897_s6, 1024  ;;  %p899_p12 = scmp.lt.s32.totalorder %s1095_s13, %s897_s6 }
  0x34   : > { %p894_p9 = pnand %p892_p6, %p878_p8  ;;  %p900_p7 = scmp.lt.s32.totalorder %s898_s7, %s891_s28 }
  0x36   : > { %p895_p0 = pneg %p894_p9  ;;  %p901_p13 = por %p900_p7, %p899_p12 }
  0x38   : > { %p902_p1 = pnand %p901_p13, %p895_p0 }
  0x3a   : > { %905 = shalt.err (!%p902_p1)
}
  0x3b   : > { %808 = dma.hbm_to_vmem [thread:$0]  (!%p1099_p3), %s1093_s11, 512, %s1095_s13, %s118_s15  }
  0x3c   : > { %p1400_p4 = scmp.lt.s32.totalorder %s990_s24, 3  ;;  %p1401_p5 = scmp.ge.s32.totalorder %s990_s24, 1 }
  0x3e   : > { %p137_p8 = pnand %p1401_p5, %p1400_p4 }
  0x3f   : > { %s1135_s8 = sand.u32 (!%p137_p8), 1, %s974_s20  }
  0x40   : > { %140 = sbr.rel (%p137_p8) target bundleno = 185 (0xb9), region = 24  ;;  %s699_s9 = sshll.u32 (!%p137_p8), %s1135_s8, 5 }
  0x41   : > { %s143_s10 = scalar_lea.sflag (!%p137_p8), [#allocation5], %s1135_s8  ;;  %s1139_s12 = scalar_lea.vmem (!%p137_p8), [#allocation4], %s699_s9 }
  0x47   : > { %961 = dma.done.wait (%p1071_p11), %s143_s10, 512  }
  0x48   : > { %963 = vsyncadd (%p1071_p11), %s143_s10, 4294966784  ;;  %s799_s11 = smul.u32 96, %s1135_s8  ;;  %v180_v0 = vlaneseq  ;;  %p1406_p12 = scmp.ne.s32.totalorder %s1396_s3, 0 }
  0x49   : > { %s1147_s13 = smul.u32 24, %s982_s22 }
  0x4a   : > { %vm1165_vm0 = vcmp.lt.s32.totalorder %v180_v0, 512  ;;  %s1171_s26 = scalar_lea.vmem [#allocation7], %s799_s11 }
  0x4b   : > { %s170_s15 = sld [smem:[#allocation3 + %s1147_s13]]  ;;  %s186_s16 = sadd.s32 1, %s1147_s13 }
  0x4c   : > { %s187_s17 = sld [smem:[#allocation3 + %s186_s16]]  ;;  %s200_s18 = sadd.s32 2, %s1147_s13 }
  0x4d   : > { %s1153_s30 = sld [smem:[#allocation3 + %s200_s18]]  ;;  %s214_s0 = sadd.s32 3, %s1147_s13 }
  0x4e   : > { %s1156_s25 = sld [smem:[#allocation3 + %s214_s0]]  ;;  %s228_s27 = sadd.s32 4, %s1147_s13 }
  0x4f   : > { %s1159_s28 = sld [smem:[#allocation3 + %s228_s27]]  ;;  %s242_s29 = sadd.s32 5, %s1147_s13 }
  0x50   : > { %s1162_s6 = sld [smem:[#allocation3 + %s242_s29]] }
  0x51   : > { %s171_s9 = sshra.s32 %s170_s15, 3  ;;  %s174_s10 = sand.u32 7, %s170_s15 }
  0x52   : > { %s775_s16 = sshll.u32 %s171_s9, 5  ;;  %s188_s18 = sshra.s32 %s187_s17, 3 }
  0x53   : > { %s177_s14 = sadd.s32 %s775_s16, %s174_s10  ;;  %s191_s0 = sand.u32 7, %s187_s17 }
  0x54   : > { %s178_s27 = scalar_lea.vmem %s1139_s12, %s177_s14 [#allocation4]  ;;  %s776_s1 = sshll.u32 %s188_s18, 5 }
  0x55   : > { %v179_v2 = vld [vmem:[%s178_s27] ss:$8 sm:$0xf]  ;;  %s194_s29 = sadd.s32 %s776_s1, %s191_s0  ;;  %s202_s7 = sshra.s32 %s1153_s30, 3 }
  0x56   : > { %184 = vst.msk [vmem:[%s1171_s26] ss:$8 sm:$0xf] %vm1165_vm0, %v179_v2  ;;  %s195_s15 = scalar_lea.vmem %s1139_s12, %s194_s29 [#allocation4]  ;;  %s205_s9 = sand.u32 7, %s1153_s30 }
  0x57   : > { %v196_v3 = vld [vmem:[%s195_s15] ss:$8 sm:$0xf]  ;;  %s777_s14 = sshll.u32 %s202_s7, 5  ;;  %s216_s17 = sshra.s32 %s1156_s25, 3 }
  0x58   : > { %704 = vst.msk [vmem:[%s1171_s26 + $0x1] ss:$8 sm:$0xf] %vm1165_vm0, %v196_v3  ;;  %s208_s1 = sadd.s32 %s777_s14, %s205_s9  ;;  %s219_s11 = sand.u32 7, %s1156_s25 }
  0x59   : > { %s209_s10 = scalar_lea.vmem %s1139_s12, %s208_s1 [#allocation4]  ;;  %s778_s16 = sshll.u32 %s216_s17, 5 }
  0x5a   : > { %v210_v4 = vld [vmem:[%s209_s10] ss:$8 sm:$0xf]  ;;  %s222_s18 = sadd.s32 %s778_s16, %s219_s11  ;;  %s230_s0 = sshra.s32 %s1159_s28, 3 }
  0x5b   : > { %707 = vst.msk [vmem:[%s1171_s26 + $0x2] ss:$8 sm:$0xf] %vm1165_vm0, %v210_v4  ;;  %s223_s30 = scalar_lea.vmem %s1139_s12, %s222_s18 [#allocation4]  ;;  %s233_s7 = sand.u32 7, %s1159_s28 }
  0x5c   : > { %v224_v5 = vld [vmem:[%s223_s30] ss:$8 sm:$0xf]  ;;  %s779_s27 = sshll.u32 %s230_s0, 5  ;;  %s244_s29 = sshra.s32 %s1162_s6, 3 }
  0x5d   : > { %710 = vst.msk [vmem:[%s1171_s26 + $0x3] ss:$8 sm:$0xf] %vm1165_vm0, %v224_v5  ;;  %s236_s25 = sadd.s32 %s779_s27, %s233_s7  ;;  %s247_s15 = sand.u32 7, %s1162_s6 }
  0x5e   : > { %s237_s9 = scalar_lea.vmem %s1139_s12, %s236_s25 [#allocation4]  ;;  %s780_s14 = sshll.u32 %s244_s29, 5 }
  0x5f   : > { %v238_v6 = vld [vmem:[%s237_s9] ss:$8 sm:$0xf]  ;;  %s250_s17 = sadd.s32 %s780_s14, %s247_s15  ;;  %s1404_s1 = sadd.s32 6, %s1147_s13 }
  0x60   : > { %s257_s11 = sld [smem:[#allocation3 + %s1404_s1]]  ;;  %713 = vst.msk [vmem:[%s1171_s26 + $0x4] ss:$8 sm:$0xf] %vm1165_vm0, %v238_v6  ;;  %s251_s28 = scalar_lea.vmem %s1139_s12, %s250_s17 [#allocation4] }
  0x61   : > { %s270_s10 = sadd.s32 7, %s1147_s13  ;;  %v252_v7 = vld [vmem:[%s251_s28] ss:$8 sm:$0xf]  ;;  %s284_s18 = sadd.s32 8, %s1147_s13 }
  0x62   : > { %s271_s16 = sld [smem:[#allocation3 + %s270_s10]]  ;;  %716 = vst.msk [vmem:[%s1171_s26 + $0x5] ss:$8 sm:$0xf] %vm1165_vm0, %v252_v7  ;;  %s298_s0 = sadd.s32 9, %s1147_s13 }
  0x63   : > { %s285_s6 = sld [smem:[#allocation3 + %s284_s18]]  ;;  %s312_s7 = sadd.s32 10, %s1147_s13 }
  0x64   : > { %s1208_s30 = sld [smem:[#allocation3 + %s298_s0]]  ;;  %s326_s29 = sadd.s32 11, %s1147_s13 }
  0x65   : > { %s1211_s27 = sld [smem:[#allocation3 + %s312_s7]] }
  0x66   : > { %s258_s25 = sshra.s32 %s257_s11, 3  ;;  %s261_s15 = sand.u32 7, %s257_s11 }
  0x67   : > { %s781_s9 = sshll.u32 %s258_s25, 5  ;;  %s1214_s14 = sld [smem:[#allocation3 + %s326_s29]] }
  0x68   : > { %s264_s17 = sadd.s32 %s781_s9, %s261_s15  ;;  %s272_s1 = sshra.s32 %s271_s16, 3 }
  0x69   : > { %s265_s28 = scalar_lea.vmem %s1139_s12, %s264_s17 [#allocation4]  ;;  %s275_s10 = sand.u32 7, %s271_s16 }
  0x6a   : > { %v266_v8 = vld [vmem:[%s265_s28] ss:$8 sm:$0xf]  ;;  %s782_s18 = sshll.u32 %s272_s1, 5  ;;  %s286_s0 = sshra.s32 %s285_s6, 3 }
  0x6b   : > { %719 = vst.msk [vmem:[%s1171_s26 + $0x6] ss:$8 sm:$0xf] %vm1165_vm0, %v266_v8  ;;  %s278_s11 = sadd.s32 %s782_s18, %s275_s10  ;;  %s289_s7 = sand.u32 7, %s285_s6 }
  0x6c   : > { %s279_s29 = scalar_lea.vmem %s1139_s12, %s278_s11 [#allocation4]  ;;  %s783_s25 = sshll.u32 %s286_s0, 5 }
  0x6d   : > { %v280_v9 = vld [vmem:[%s279_s29] ss:$8 sm:$0xf]  ;;  %s292_s15 = sadd.s32 %s783_s25, %s289_s7  ;;  %s300_s9 = sshra.s32 %s1208_s30, 3 }
  0x6e   : > { %722 = vst.msk [vmem:[%s1171_s26 + $0x7] ss:$8 sm:$0xf] %vm1165_vm0, %v280_v9  ;;  %s293_s16 = scalar_lea.vmem %s1139_s12, %s292_s15 [#allocation4]  ;;  %s303_s17 = sand.u32 7, %s1208_s30 }
  0x6f   : > { %v294_v10 = vld [vmem:[%s293_s16] ss:$8 sm:$0xf]  ;;  %s784_s1 = sshll.u32 %s300_s9, 5  ;;  %s314_s28 = sshra.s32 %s1211_s27, 3 }
  0x70   : > { %725 = vst.msk [vmem:[%s1171_s26 + $0x20] ss:$8 sm:$0xf] %vm1165_vm0, %v294_v10  ;;  %s306_s6 = sadd.s32 %s784_s1, %s303_s17  ;;  %s317_s10 = sand.u32 7, %s1211_s27 }
  0x71   : > { %s307_s18 = scalar_lea.vmem %s1139_s12, %s306_s6 [#allocation4]  ;;  %s785_s0 = sshll.u32 %s314_s28, 5 }
  0x72   : > { %v308_v11 = vld [vmem:[%s307_s18] ss:$8 sm:$0xf]  ;;  %s320_s11 = sadd.s32 %s785_s0, %s317_s10  ;;  %s328_s7 = sshra.s32 %s1214_s14, 3 }
  0x73   : > { %728 = vst.msk [vmem:[%s1171_s26 + $0x21] ss:$8 sm:$0xf] %vm1165_vm0, %v308_v11  ;;  %s321_s30 = scalar_lea.vmem %s1139_s12, %s320_s11 [#allocation4]  ;;  %s331_s29 = sand.u32 7, %s1214_s14 }
  0x74   : > { %v322_v12 = vld [vmem:[%s321_s30] ss:$8 sm:$0xf]  ;;  %s786_s25 = sshll.u32 %s328_s7, 5  ;;  %s340_s15 = sadd.s32 12, %s1147_s13 }
  0x75   : > { %731 = vst.msk [vmem:[%s1171_s26 + $0x22] ss:$8 sm:$0xf] %vm1165_vm0, %v322_v12  ;;  %s334_s27 = sadd.s32 %s786_s25, %s331_s29  ;;  %s341_s9 = sld [smem:[#allocation3 + %s340_s15]] }
  0x76   : > { %s335_s16 = scalar_lea.vmem %s1139_s12, %s334_s27 [#allocation4]  ;;  %s354_s17 = sadd.s32 13, %s1147_s13 }
  0x77   : > { %v336_v13 = vld [vmem:[%s335_s16] ss:$8 sm:$0xf]  ;;  %s355_s1 = sld [smem:[#allocation3 + %s354_s17]]  ;;  %s368_s28 = sadd.s32 14, %s1147_s13 }
  0x78   : > { %734 = vst.msk [vmem:[%s1171_s26 + $0x23] ss:$8 sm:$0xf] %vm1165_vm0, %v336_v13  ;;  %s369_s14 = sld [smem:[#allocation3 + %s368_s28]]  ;;  %s382_s6 = sadd.s32 15, %s1147_s13 }
  0x79   : > { %s1250_s10 = sld [smem:[#allocation3 + %s382_s6]]  ;;  %s396_s18 = sadd.s32 16, %s1147_s13 }
  0x7a   : > { %s1253_s0 = sld [smem:[#allocation3 + %s396_s18]]  ;;  %s410_s11 = sadd.s32 17, %s1147_s13 }
  0x7b   : > { %s342_s7 = sshra.s32 %s341_s9, 3  ;;  %s345_s30 = sand.u32 7, %s341_s9 }
  0x7c   : > { %s787_s29 = sshll.u32 %s342_s7, 5  ;;  %s1256_s25 = sld [smem:[#allocation3 + %s410_s11]] }
  0x7d   : > { %s348_s15 = sadd.s32 %s787_s29, %s345_s30  ;;  %s356_s27 = sshra.s32 %s355_s1, 3 }
  0x7e   : > { %s349_s16 = scalar_lea.vmem %s1139_s12, %s348_s15 [#allocation4]  ;;  %s359_s17 = sand.u32 7, %s355_s1 }
  0x7f   : > { %v350_v14 = vld [vmem:[%s349_s16] ss:$8 sm:$0xf]  ;;  %s788_s28 = sshll.u32 %s356_s27, 5  ;;  %s370_s6 = sshra.s32 %s369_s14, 3 }
  0x80   : > { %737 = vst.msk [vmem:[%s1171_s26 + $0x24] ss:$8 sm:$0xf] %vm1165_vm0, %v350_v14  ;;  %s362_s9 = sadd.s32 %s788_s28, %s359_s17  ;;  %s373_s18 = sand.u32 7, %s369_s14 }
  0x81   : > { %s363_s11 = scalar_lea.vmem %s1139_s12, %s362_s9 [#allocation4]  ;;  %s789_s7 = sshll.u32 %s370_s6, 5 }
  0x82   : > { %v364_v15 = vld [vmem:[%s363_s11] ss:$8 sm:$0xf]  ;;  %s376_s30 = sadd.s32 %s789_s7, %s373_s18  ;;  %s384_s29 = sshra.s32 %s1250_s10, 3 }
  0x83   : > { %740 = vst.msk [vmem:[%s1171_s26 + $0x25] ss:$8 sm:$0xf] %vm1165_vm0, %v364_v15  ;;  %s377_s1 = scalar_lea.vmem %s1139_s12, %s376_s30 [#allocation4]  ;;  %s387_s15 = sand.u32 7, %s1250_s10 }
  0x84   : > { %v378_v16 = vld [vmem:[%s377_s1] ss:$8 sm:$0xf]  ;;  %s790_s27 = sshll.u32 %s384_s29, 5  ;;  %s398_s16 = sshra.s32 %s1253_s0, 3 }
  0x85   : > { %743 = vst.msk [vmem:[%s1171_s26 + $0x26] ss:$8 sm:$0xf] %vm1165_vm0, %v378_v16  ;;  %s390_s14 = sadd.s32 %s790_s27, %s387_s15  ;;  %s401_s17 = sand.u32 7, %s1253_s0 }
  0x86   : > { %s391_s28 = scalar_lea.vmem %s1139_s12, %s390_s14 [#allocation4]  ;;  %s791_s6 = sshll.u32 %s398_s16, 5 }
  0x87   : > { %v392_v17 = vld [vmem:[%s391_s28] ss:$8 sm:$0xf]  ;;  %s404_s9 = sadd.s32 %s791_s6, %s401_s17  ;;  %s412_s18 = sshra.s32 %s1256_s25, 3 }
  0x88   : > { %746 = vst.msk [vmem:[%s1171_s26 + $0x27] ss:$8 sm:$0xf] %vm1165_vm0, %v392_v17  ;;  %s405_s10 = scalar_lea.vmem %s1139_s12, %s404_s9 [#allocation4]  ;;  %s415_s11 = sand.u32 7, %s1256_s25 }
  0x89   : > { %v406_v18 = vld [vmem:[%s405_s10] ss:$8 sm:$0xf]  ;;  %s792_s7 = sshll.u32 %s412_s18, 5  ;;  %s424_s30 = sadd.s32 18, %s1147_s13 }
  0x8a   : > { %749 = vst.msk [vmem:[%s1171_s26 + $0x40] ss:$8 sm:$0xf] %vm1165_vm0, %v406_v18  ;;  %s418_s0 = sadd.s32 %s792_s7, %s415_s11  ;;  %s425_s29 = sld [smem:[#allocation3 + %s424_s30]] }
  0x8b   : > { %s419_s1 = scalar_lea.vmem %s1139_s12, %s418_s0 [#allocation4]  ;;  %s438_s15 = sadd.s32 19, %s1147_s13 }
  0x8c   : > { %v420_v19 = vld [vmem:[%s419_s1] ss:$8 sm:$0xf]  ;;  %s439_s27 = sld [smem:[#allocation3 + %s438_s15]]  ;;  %s452_s16 = sadd.s32 20, %s1147_s13 }
  0x8d   : > { %752 = vst.msk [vmem:[%s1171_s26 + $0x41] ss:$8 sm:$0xf] %vm1165_vm0, %v420_v19  ;;  %s453_s25 = sld [smem:[#allocation3 + %s452_s16]]  ;;  %s466_s14 = sadd.s32 21, %s1147_s13 }
  0x8e   : > { %s1292_s17 = sld [smem:[#allocation3 + %s466_s14]]  ;;  %s480_s28 = sadd.s32 22, %s1147_s13 }
  0x8f   : > { %s1295_s6 = sld [smem:[#allocation3 + %s480_s28]]  ;;  %s494_s9 = sadd.s32 23, %s1147_s13 }
  0x90   : > { %s426_s18 = sshra.s32 %s425_s29, 3  ;;  %s429_s10 = sand.u32 7, %s425_s29 }
  0x91   : > { %s793_s11 = sshll.u32 %s426_s18, 5  ;;  %s1298_s7 = sld [smem:[#allocation3 + %s494_s9]] }
  0x92   : > { %s432_s30 = sadd.s32 %s793_s11, %s429_s10  ;;  %s440_s0 = sshra.s32 %s439_s27, 3 }
  0x93   : > { %s433_s1 = scalar_lea.vmem %s1139_s12, %s432_s30 [#allocation4]  ;;  %s443_s15 = sand.u32 7, %s439_s27 }
  0x94   : > { %v434_v20 = vld [vmem:[%s433_s1] ss:$8 sm:$0xf]  ;;  %s794_s16 = sshll.u32 %s440_s0, 5  ;;  %s454_s14 = sshra.s32 %s453_s25, 3 }
  0x95   : > { %755 = vst.msk [vmem:[%s1171_s26 + $0x42] ss:$8 sm:$0xf] %vm1165_vm0, %v434_v20  ;;  %s446_s13 = sadd.s32 %s794_s16, %s443_s15  ;;  %s457_s29 = sand.u32 7, %s453_s25 }
  0x96   : > { %s447_s28 = scalar_lea.vmem %s1139_s12, %s446_s13 [#allocation4]  ;;  %s795_s9 = sshll.u32 %s454_s14, 5 }
  0x97   : > { %v448_v21 = vld [vmem:[%s447_s28] ss:$8 sm:$0xf]  ;;  %s460_s18 = sadd.s32 %s795_s9, %s457_s29  ;;  %s468_s10 = sshra.s32 %s1292_s17, 3 }
  0x98   : > { %758 = vst.msk [vmem:[%s1171_s26 + $0x43] ss:$8 sm:$0xf] %vm1165_vm0, %v448_v21  ;;  %s461_s27 = scalar_lea.vmem %s1139_s12, %s460_s18 [#allocation4]  ;;  %s471_s11 = sand.u32 7, %s1292_s17 }
  0x99   : > { %v462_v22 = vld [vmem:[%s461_s27] ss:$8 sm:$0xf]  ;;  %s796_s30 = sshll.u32 %s468_s10, 5  ;;  %s482_s0 = sshra.s32 %s1295_s6, 3 }
  0x9a   : > { %761 = vst.msk [vmem:[%s1171_s26 + $0x44] ss:$8 sm:$0xf] %vm1165_vm0, %v462_v22  ;;  %s474_s25 = sadd.s32 %s796_s30, %s471_s11  ;;  %s485_s1 = sand.u32 7, %s1295_s6 }
  0x9b   : > { %s475_s15 = scalar_lea.vmem %s1139_s12, %s474_s25 [#allocation4]  ;;  %s797_s16 = sshll.u32 %s482_s0, 5 }
  0x9c   : > { %v476_v23 = vld [vmem:[%s475_s15] ss:$8 sm:$0xf]  ;;  %s488_s14 = sadd.s32 %s797_s16, %s485_s1  ;;  %s496_s13 = sshra.s32 %s1298_s7, 3 }
  0x9d   : > { %764 = vst.msk [vmem:[%s1171_s26 + $0x45] ss:$8 sm:$0xf] %vm1165_vm0, %v476_v23  ;;  %s489_s17 = scalar_lea.vmem %s1139_s12, %s488_s14 [#allocation4]  ;;  %s499_s29 = sand.u32 7, %s1298_s7 }
  0x9e   : > { %v490_v24 = vld [vmem:[%s489_s17] ss:$8 sm:$0xf]  ;;  %s798_s28 = sshll.u32 %s496_s13, 5  ;;  %s1405_s9 = smul.u32 1536, %s982_s22 }
  0x9f   : > { %767 = vst.msk [vmem:[%s1171_s26 + $0x46] ss:$8 sm:$0xf] %vm1165_vm0, %v490_v24  ;;  %s502_s27 = sadd.s32 %s798_s28, %s499_s29  ;;  %s527_s11 = sshll.u32 %s1171_s26, 4  ;;  %s1335_s11 = int_to_ptr.vmem [resolvable:$true] %s527_s11 }
  0xa0   : > { %s1328_s6 = scalar_lea.hbm %s1389_s2, %s1405_s9  ;;  %s503_s30 = scalar_lea.vmem %s1139_s12, %s502_s27 [#allocation4] }
  0xa1   : > { %v504_v25 = vld [vmem:[%s503_s30] ss:$8 sm:$0xf]  ;;  %s509_s22 = scalar_lea.sflag [#allocation6], %s1135_s8  ;;  %s906_s7 = scalar_lea.vmem %s1335_s11, 1536 }
  0xa2   : > { %770 = vst.msk [vmem:[%s1171_s26 + $0x47] ss:$8 sm:$0xf] %vm1165_vm0, %v504_v25  ;;  %p907_p11 = scmp.ne.s32.totalorder %s1335_s11, %s906_s7  ;;  %s994_s0 = smov [#allocation7]  }
  0xa3   : > { %s910_s25 = sshll.u32 %s994_s0, 4  ;;  %s911_s25 = int_to_ptr.vmem [resolvable:$false] %s910_s25 }
  0xa4   : > { %p908_p0 = pnand %p907_p11, %p1406_p12  ;;  %s912_s1 = scalar_lea.vmem %s911_s25, 3072 }
  0xa5   : > { %p913_p10 = scmp.lt.s32.totalorder %s1335_s11, %s911_s25  ;;  %p914_p2 = scmp.lt.s32.totalorder %s912_s1, %s906_s7 }
  0xa6   : > { %p909_p3 = pneg %p908_p0 }
  0xa7   : > { %p915_p6 = por %p914_p2, %p913_p10 }
  0xa9   : > { %p916_p9 = pnand %p915_p6, %p909_p3 }
  0xab   : > { %919 = shalt.err (!%p916_p9)
}
  0xac   : > { %s920_s26 = scalar_lea.hbm %s1328_s6, 1536  ;;  %s924_s16 = scalar_lea.hbm %s1389_s2, 3072 }
  0xad   : > { %p921_p7 = scmp.ne.s32.totalorder %s1328_s6, %s920_s26  ;;  %p925_p4 = scmp.lt.u32.totalorder %s1328_s6, %s1389_s2 }
  0xae   : > { %p926_p5 = scmp.lt.u32.totalorder %s924_s16, %s920_s26  ;;  %p928_p11 = scmp.lt.u32.totalorder %s920_s26, %s1328_s6 }
  0xaf   : > { %p922_p13 = pnand %p921_p7, %p1406_p12 }
  0xb0   : > { %p927_p8 = por %p926_p5, %p925_p4 }
  0xb1   : > { %p923_p1 = pneg %p922_p13 }
  0xb2   : > { %p929_p0 = por %p928_p11, %p927_p8 }
  0xb4   : > { %p930_p3 = pnand %p929_p0, %p923_p1 }
  0xb6   : > { %933 = shalt.err (!%p930_p3)
}
  0xb7   : > { %s995_s17 = smov 512   ;;  %s996_s29 = smov 32  }
  0xb8   : > { %803 = dma.vmem_to_hbm [thread:$0]  (%p1406_p12), %s1335_s11, 1536, %s1328_s6, %s509_s22, %s995_s17, %s995_s17, %s996_s29  }
  0xb9 PF: > { %s542_s28 = sand.u32 1, %s970_s19   ;;  %p1407_p10 = scmp.ne.s32.totalorder %s1397_s5, 0 }
  0xba   : > { %p1408_p2 = scmp.ge.s32.totalorder %s990_s24, 2  ;;  %s543_s9 = scalar_lea.sflag [#allocation6], %s542_s28 }
  0xbc   : > { %p810_p6 = pnand %p1408_p2, %p1407_p10 }
  0xbe   : > { %965 = dma.done.wait (!%p810_p6), %s543_s9, 1536  }
  0xbf   : > { %967 = vsyncadd (!%p810_p6), %s543_s9, 4294965760  ;;  %s22_s24 = sadd.s32 1, %s990_s24   ;;  %s1409_s3 = sld [smem:[#allocation11_spill]] }
  0xc0   : > { %p19_p9 = scmp.ge.s32.totalorder %s22_s24, 4   ;;  %s1410_s19 = smov %s974_s20 }
  0xc1   : > { %s1411_s20 = smov %s978_s21  ;;  %s1412_s21 = smov %s1080_s4 }
  0xc2   : > { %s1413_s22 = smov %s986_s23  ;;  %21 = sbr.rel (!%p19_p9) target bundleno = 18 (0x12), region = 116 }
  0xc5   : > { %s1414_s23 = smov %s1409_s3 }
  0xc9   :  { %548 = vsyncpa [#allocation5], 1 }
  0xca   :  { %550 = vsyncpa [#allocation5 + $0x1], 1 }
  0xcb   :  { %551 = vsyncpa [#allocation6], 1 }
  0xcc   :  { %553 = vsyncpa [#allocation6 + $0x1], 1 }

</bundles_post_ra>
